<compile_context>
chip_gen: v5e
topology: v5e:2x2
jax: 0.10.0
libtpu: 0.0.40
codegen_flags: <defaults>
</compile_context>

<pallas_src>
import functools

import jax
import jax.numpy as jnp
from jax.experimental import pallas as pl
from jax.experimental.pallas import tpu as pltpu


def _round_up(n: int, m: int) -> int:
    return ((n + m - 1) // m) * m


def _cdiv(a: int, b: int) -> int:
    return -(-a // b)


def _pad2d(a, rows: int, cols: int):
    r, c = a.shape
    return jnp.pad(a, ((0, rows - r), (0, cols - c)))


def actor_kernel(x_ref, w1_ref, b1_ref, w2_ref, b2_ref, w3_ref, b3_ref, o_ref):
    # layer 1: small-K (n_states) bf16 matmul, f32 accumulate, f32 bias + relu
    h = jnp.dot(x_ref[...], w1_ref[...], preferred_element_type=jnp.float32)
    h = jnp.maximum(h + b1_ref[...], 0.0)
    # layer 2
    h = jnp.dot(h.astype(w2_ref.dtype), w2_ref[...],
                preferred_element_type=jnp.float32)
    h = jnp.maximum(h + b2_ref[...], 0.0)
    # layer 3 + tanh (EUP slot), store bf16 to halve writeback
    y = jnp.dot(h.astype(w3_ref.dtype), w3_ref[...],
                preferred_element_type=jnp.float32)
    o_ref[...] = jnp.tanh(y + b3_ref[...]).astype(o_ref.dtype)


def prepare_actor_params(params):
    """Pad + cast the Actor params ONCE (call outside the training/act loop).

    Zero padding is exact for this ReLU/tanh MLP: padded hidden units get zero
    weight + zero bias -> relu(0)=0 -> no downstream contribution; padded
    action columns are sliced off in actor_forward.
    """
    w1, b1, w2, b2, w3, b3 = params
    n_states, hidden = w1.shape
    n_actions = w3.shape[1]
    h_pad = _round_up(hidden, 128)
    a_pad = _round_up(n_actions, 128)

    w1p = _pad2d(w1, n_states, h_pad).astype(jnp.bfloat16)  # K stays unpadded
    w2p = _pad2d(w2, h_pad, h_pad).astype(jnp.bfloat16)
    w3p = _pad2d(w3, h_pad, a_pad).astype(jnp.bfloat16)
    b1p = _pad2d(b1.reshape(1, -1), 1, h_pad).astype(jnp.float32)
    b2p = _pad2d(b2.reshape(1, -1), 1, h_pad).astype(jnp.float32)
    b3p = _pad2d(b3.reshape(1, -1), 1, a_pad).astype(jnp.float32)
    return (w1p, b1p, w2p, b2p, w3p, b3p)


@functools.partial(jax.jit, static_argnames=("n_actions", "block_batch"))
def actor_forward(x, prepared, *, n_actions: int, block_batch: int = 1024):
    """Fused 3-layer MLP (relu, relu, tanh) using pre-padded bf16 params."""
    w1p, b1p, w2p, b2p, w3p, b3p = prepared
    batch, n_states = x.shape
    assert w1p.shape[0] == n_states
    h_pad = w1p.shape[1]
    a_pad = w3p.shape[1]

    # Balanced batch tiles; >= 2 (even) grid steps when batch >= 16 so the
    # "parallel" axis can shard across v7x's two TensorCores.
    n_steps = max(1, _cdiv(batch, block_batch))
    if batch >= 16 and n_steps < 2:
        n_steps = 2
    if n_steps > 1 and n_steps % 2:
        n_steps += 1
    tb = _round_up(_cdiv(batch, n_steps), 8)
    b_pad = _round_up(batch, tb)
    grid = (b_pad // tb,)

    # Single fused op: pad batch rows (tiny) + cast to bf16. No lane padding.
    xp = jnp.pad(x, ((0, b_pad - batch), (0, 0))).astype(jnp.bfloat16)

    out = pl.pallas_call(
        actor_kernel,
        out_shape=jax.ShapeDtypeStruct((b_pad, a_pad), jnp.bfloat16),
        grid_spec=pltpu.PrefetchScalarGridSpec(
            num_scalar_prefetch=0,
            grid=grid,
            in_specs=[
                # batch-tiled activation stream (double-buffered by Mosaic),
                # minor dim = full (tiny) n_states -> no lane inflation in HBM
                pl.BlockSpec((tb, n_states), lambda i: (i, 0)),
                # weights / biases: constant block index -> resident in VMEM
                pl.BlockSpec((n_states, h_pad), lambda i: (0, 0)),
                pl.BlockSpec((1, h_pad), lambda i: (0, 0)),
                pl.BlockSpec((h_pad, h_pad), lambda i: (0, 0)),
                pl.BlockSpec((1, h_pad), lambda i: (0, 0)),
                pl.BlockSpec((h_pad, a_pad), lambda i: (0, 0)),
                pl.BlockSpec((1, a_pad), lambda i: (0, 0)),
            ],
            out_specs=pl.BlockSpec((tb, a_pad), lambda i: (i, 0)),
        ),
        compiler_params=pltpu.CompilerParams(
            dimension_semantics=("parallel",),   # megacore split on v7x
        ),
    )(xp, w1p, b1p, w2p, b2p, w3p, b3p)

    # Tiny slice + cast back to f32 (fused by XLA) for torch-interface parity.
    return out[:batch, :n_actions].astype(jnp.float32)


def init_actor_params(key, n_states, n_actions, hidden_dim=256, init_w=0.003):
    """Mirror PyTorch Actor init; weights stored transposed: (in, out)."""
    k1, k2, k3, k4, k5, k6 = jax.random.split(key, 6)

    bnd1 = 1.0 / jnp.sqrt(n_states)
    w1 = jax.random.uniform(k1, (n_states, hidden_dim), jnp.float32, -bnd1, bnd1)
    b1 = jax.random.uniform(k2, (1, hidden_dim), jnp.float32, -bnd1, bnd1)

    bnd2 = 1.0 / jnp.sqrt(hidden_dim)
    w2 = jax.random.uniform(k3, (hidden_dim, hidden_dim), jnp.float32, -bnd2, bnd2)
    b2 = jax.random.uniform(k4, (1, hidden_dim), jnp.float32, -bnd2, bnd2)

    w3 = jax.random.uniform(k5, (hidden_dim, n_actions), jnp.float32, -init_w, init_w)
    b3 = jax.random.uniform(k6, (1, n_actions), jnp.float32, -init_w, init_w)

    return (w1, b1, w2, b2, w3, b3)


def actor_reference(x, params):
    w1, b1, w2, b2, w3, b3 = params
    h = jnp.maximum(x @ w1 + b1, 0.0)
    h = jnp.maximum(h @ w2 + b2, 0.0)
    return jnp.tanh(h @ w3 + b3)


if __name__ == "__main__":
    key = jax.random.PRNGKey(0)
    n_states, n_actions, hidden_dim, batch = 8, 4, 32, 2

    kx, kp = jax.random.split(key)
    x = jax.random.normal(kx, (batch, n_states), jnp.float32)
    params = init_actor_params(kp, n_states, n_actions, hidden_dim)
    prepared = prepare_actor_params(params)   # pad/cast ONCE, reuse every call

    out = jax.block_until_ready(actor_forward(x, prepared, n_actions=n_actions))
    ref = actor_reference(x, params)
    assert out.shape == (batch, n_actions)
    assert out.dtype == jnp.float32
    # bf16 matmul inputs / bf16 output with f32 accumulation -> relaxed tol
    assert jnp.allclose(out, ref, atol=2e-2, rtol=0.0), (
        f"max abs err {float(jnp.max(jnp.abs(out - ref)))}")

    # Larger batch exercising multiple grid steps (and v7x 2-TC sharding).
    batch2 = 1500
    kx2, _ = jax.random.split(kx)
    x2 = jax.random.normal(kx2, (batch2, n_states), jnp.float32)
    out2 = jax.block_until_ready(actor_forward(x2, prepared, n_actions=n_actions))
    ref2 = actor_reference(x2, params)
    assert out2.shape == (batch2, n_actions)
    assert jnp.allclose(out2, ref2, atol=2e-2, rtol=0.0), (
        f"max abs err {float(jnp.max(jnp.abs(out2 - ref2)))}")

    print("KERNEL_OK")
</pallas_src>

<mosaic_0001>
module attributes {stable_mosaic.version = 11 : i64} {
  func.func @actor_kernel(%arg0: i32, %arg1: memref<8x8xbf16, #tpu.memory_space<vmem>>, %arg2: memref<8x128xbf16, #tpu.memory_space<vmem>>, %arg3: memref<1x128xf32, #tpu.memory_space<vmem>>, %arg4: memref<128x128xbf16, #tpu.memory_space<vmem>>, %arg5: memref<1x128xf32, #tpu.memory_space<vmem>>, %arg6: memref<128x128xbf16, #tpu.memory_space<vmem>>, %arg7: memref<1x128xf32, #tpu.memory_space<vmem>>, %arg8: memref<8x128xbf16, #tpu.memory_space<vmem>>) attributes {dimension_semantics = [#tpu.dimension_semantics<parallel>], iteration_bounds = array<i64: 1>, scalar_prefetch = 0 : i64, scratch_operands = 0 : i64, tpu.core_type = #tpu.core_type<tc>, window_params = [{transform_indices = @transform_0, window_bounds = array<i64: 8, 8>}, {pipeline_mode = #tpu.pipeline_mode<synchronous>, transform_indices = @transform_1, window_bounds = array<i64: 8, 128>}, {pipeline_mode = #tpu.pipeline_mode<synchronous>, transform_indices = @transform_2, window_bounds = array<i64: 1, 128>}, {pipeline_mode = #tpu.pipeline_mode<synchronous>, transform_indices = @transform_3, window_bounds = array<i64: 128, 128>}, {pipeline_mode = #tpu.pipeline_mode<synchronous>, transform_indices = @transform_4, window_bounds = array<i64: 1, 128>}, {pipeline_mode = #tpu.pipeline_mode<synchronous>, transform_indices = @transform_5, window_bounds = array<i64: 128, 128>}, {pipeline_mode = #tpu.pipeline_mode<synchronous>, transform_indices = @transform_6, window_bounds = array<i64: 1, 128>}, {transform_indices = @transform_7, window_bounds = array<i64: 8, 128>}]} {
    %c0 = arith.constant 0 : index
    %c0_0 = arith.constant 0 : index
    %0 = vector.load %arg1[%c0, %c0_0] : memref<8x8xbf16, #tpu.memory_space<vmem>>, vector<8x8xbf16>
    %c0_1 = arith.constant 0 : index
    %c0_2 = arith.constant 0 : index
    %1 = vector.load %arg2[%c0_1, %c0_2] : memref<8x128xbf16, #tpu.memory_space<vmem>>, vector<8x128xbf16>
    %cst = arith.constant dense<0.000000e+00> : vector<8x128xf32>
    %2 = tpu.matmul %0, %1, %cst {dimension_numbers = #tpu.dot_dimension_numbers<[1], [0], [0], [1], [0, 0, 1, 1], [], []>} : vector<8x8xbf16>, vector<8x128xbf16>, vector<8x128xf32> -> vector<8x128xf32>
    %c0_3 = arith.constant 0 : index
    %c0_4 = arith.constant 0 : index
    %3 = vector.load %arg3[%c0_3, %c0_4] : memref<1x128xf32, #tpu.memory_space<vmem>>, vector<1x128xf32>
    %4 = vector.broadcast %3 : vector<1x128xf32> to vector<8x128xf32>
    %5 = arith.addf %2, %4 : vector<8x128xf32>
    %cst_5 = arith.constant 0.000000e+00 : f32
    %6 = vector.broadcast %cst_5 : f32 to vector<8x128xf32>
    %7 = arith.maximumf %5, %6 : vector<8x128xf32>
    %8 = arith.truncf %7 : vector<8x128xf32> to vector<8x128xbf16>
    %c0_6 = arith.constant 0 : index
    %c0_7 = arith.constant 0 : index
    %9 = vector.load %arg4[%c0_6, %c0_7] : memref<128x128xbf16, #tpu.memory_space<vmem>>, vector<128x128xbf16>
    %cst_8 = arith.constant dense<0.000000e+00> : vector<8x128xf32>
    %10 = tpu.matmul %8, %9, %cst_8 {dimension_numbers = #tpu.dot_dimension_numbers<[1], [0], [0], [1], [0, 0, 1, 1], [], []>} : vector<8x128xbf16>, vector<128x128xbf16>, vector<8x128xf32> -> vector<8x128xf32>
    %c0_9 = arith.constant 0 : index
    %c0_10 = arith.constant 0 : index
    %11 = vector.load %arg5[%c0_9, %c0_10] : memref<1x128xf32, #tpu.memory_space<vmem>>, vector<1x128xf32>
    %12 = vector.broadcast %11 : vector<1x128xf32> to vector<8x128xf32>
    %13 = arith.addf %10, %12 : vector<8x128xf32>
    %cst_11 = arith.constant 0.000000e+00 : f32
    %14 = vector.broadcast %cst_11 : f32 to vector<8x128xf32>
    %15 = arith.maximumf %13, %14 : vector<8x128xf32>
    %16 = arith.truncf %15 : vector<8x128xf32> to vector<8x128xbf16>
    %c0_12 = arith.constant 0 : index
    %c0_13 = arith.constant 0 : index
    %17 = vector.load %arg6[%c0_12, %c0_13] : memref<128x128xbf16, #tpu.memory_space<vmem>>, vector<128x128xbf16>
    %cst_14 = arith.constant dense<0.000000e+00> : vector<8x128xf32>
    %18 = tpu.matmul %16, %17, %cst_14 {dimension_numbers = #tpu.dot_dimension_numbers<[1], [0], [0], [1], [0, 0, 1, 1], [], []>} : vector<8x128xbf16>, vector<128x128xbf16>, vector<8x128xf32> -> vector<8x128xf32>
    %c0_15 = arith.constant 0 : index
    %c0_16 = arith.constant 0 : index
    %19 = vector.load %arg7[%c0_15, %c0_16] : memref<1x128xf32, #tpu.memory_space<vmem>>, vector<1x128xf32>
    %20 = vector.broadcast %19 : vector<1x128xf32> to vector<8x128xf32>
    %21 = arith.addf %18, %20 : vector<8x128xf32>
    %22 = math.tanh %21 : vector<8x128xf32>
    %23 = arith.truncf %22 : vector<8x128xf32> to vector<8x128xbf16>
    %c0_17 = arith.constant 0 : index
    %c0_18 = arith.constant 0 : index
    %24 = vector.load %arg8[%c0_17, %c0_18] : memref<8x128xbf16, #tpu.memory_space<vmem>>, vector<8x128xbf16>
    tpu.vector_store %arg8[%c0_17, %c0_18], %23 {strides = array<i32>} : memref<8x128xbf16, #tpu.memory_space<vmem>>, vector<8x128xbf16>,
    return
  }
  func.func @transform_0(%arg0: i32) -> (i32, i32) {
    %c0_i32 = arith.constant 0 : i32
    %c0_i32_0 = arith.constant 0 : i32
    return %arg0, %c0_i32 : i32, i32
  }
  func.func @transform_1(%arg0: i32) -> (i32, i32) {
    %c0_i32 = arith.constant 0 : i32
    %c0_i32_0 = arith.constant 0 : i32
    %c0_i32_1 = arith.constant 0 : i32
    return %c0_i32, %c0_i32_0 : i32, i32
  }
  func.func @transform_2(%arg0: i32) -> (i32, i32) {
    %c0_i32 = arith.constant 0 : i32
    %c0_i32_0 = arith.constant 0 : i32
    %c0_i32_1 = arith.constant 0 : i32
    return %c0_i32, %c0_i32_0 : i32, i32
  }
  func.func @transform_3(%arg0: i32) -> (i32, i32) {
    %c0_i32 = arith.constant 0 : i32
    %c0_i32_0 = arith.constant 0 : i32
    %c0_i32_1 = arith.constant 0 : i32
    return %c0_i32, %c0_i32_0 : i32, i32
  }
  func.func @transform_4(%arg0: i32) -> (i32, i32) {
    %c0_i32 = arith.constant 0 : i32
    %c0_i32_0 = arith.constant 0 : i32
    %c0_i32_1 = arith.constant 0 : i32
    return %c0_i32, %c0_i32_0 : i32, i32
  }
  func.func @transform_5(%arg0: i32) -> (i32, i32) {
    %c0_i32 = arith.constant 0 : i32
    %c0_i32_0 = arith.constant 0 : i32
    %c0_i32_1 = arith.constant 0 : i32
    return %c0_i32, %c0_i32_0 : i32, i32
  }
  func.func @transform_6(%arg0: i32) -> (i32, i32) {
    %c0_i32 = arith.constant 0 : i32
    %c0_i32_0 = arith.constant 0 : i32
    %c0_i32_1 = arith.constant 0 : i32
    return %c0_i32, %c0_i32_0 : i32, i32
  }
  func.func @transform_7(%arg0: i32) -> (i32, i32) {
    %c0_i32 = arith.constant 0 : i32
    %c0_i32_0 = arith.constant 0 : i32
    return %arg0, %c0_i32 : i32, i32
  }
}

</mosaic_0001>

<bundles_post_ra>
// kernel: actor_forward.1
= control target key start
LH: loop header
LB: loop body
LE: loop exit
PB: predicated region body
PF: predicated region fallthrough
CT: control target
= control target key end

     0   :  { %12 = vsyncpa [#allocation3], 0  ;;  %s471_s0 = inlined_call_operand.vmem [shape: bf16[8,8], index: 0, kind: input, shape index: {}]   ;;  %s472_s1 = inlined_call_operand.vmem [shape: bf16[8,128], index: 1, kind: input, shape index: {}]   ;;  %s473_s2 = inlined_call_operand.vmem [shape: f32[1,128], index: 2, kind: input, shape index: {}]   ;;  %s474_s3 = inlined_call_operand.hbm [shape: bf16[128,128], index: 3, kind: input, shape index: {}]   ;;  %s475_s4 = inlined_call_operand.vmem [shape: f32[1,128], index: 4, kind: input, shape index: {}]   ;;  %s476_s5 = inlined_call_operand.hbm [shape: bf16[128,128], index: 5, kind: input, shape index: {}]   ;;  %s477_s6 = inlined_call_operand.vmem [shape: f32[1,128], index: 6, kind: input, shape index: {}]   ;;  %s478_s7 = inlined_call_operand.vmem [shape: bf16[8,128], index: 7, kind: output, shape index: {}]  }
   0x1   :  { %s24_s26 = sshll.u32 %s474_s3, 4  ;;  %s25_s26 = int_to_ptr.hbm [resolvable:$true] %s24_s26 }
   0x2   :  { %13 = vsyncpa [#allocation5], 0  ;;  %s403_s27 = smov [#allocation2]   ;;  %s39_s8 = sshll.u32 %s476_s5, 4  ;;  %s40_s8 = int_to_ptr.hbm [resolvable:$true] %s39_s8 }
   0x3   :  { %s26_s28 = sshll.u32 %s403_s27, 4  ;;  %s404_s9 = smov 64   ;;  %s27_s28 = int_to_ptr.vmem [resolvable:$true] %s26_s28 }
   0x4   :  { %s405_s10 = smov 4   ;;  %s406_s11 = smov [#allocation4]  }
   0x5   :  { %32 = dma.hbm_to_vmem [thread:$0]  %s25_s26, 1024, %s27_s28, [#allocation3], %s404_s9, %s404_s9, %s405_s10  }
   0x6   :  { %s41_s12 = sshll.u32 %s406_s11, 4  ;;  %s42_s12 = int_to_ptr.vmem [resolvable:$true] %s41_s12 }
   0x7   :  { %47 = dma.hbm_to_vmem [thread:$0]  %s40_s8, 1024, %s42_s12, [#allocation5], %s404_s9, %s404_s9, %s405_s10  }
   0x8   :  { %399 = dma.done.wait [#allocation3], 1024  }
   0x9   :  { %400 = vsyncadd [#allocation3], 4294966272 }
   0xa   :  { %401 = dma.done.wait [#allocation5], 1024  }
   0xb   :  { %402 = vsyncadd [#allocation5], 4294966272  ;;  %vm69_vm0 = vcmask 1043456   ;;  %v60_v0 = vld [vmem:[%s472_s1] sm:$0xf]  ;;  %v333_v1 = vld [vmem:[#allocation2 + $0x38] sm:$0xff] }
   0xc   :  { %v71_v2 = vsel %vm69_vm0, %v60_v0, 0  ;;  %v59_v3 = vld [vmem:[%s471_s0] sm:$0xf]  ;;  %vm65_vm1 = vcmask 64512   ;;  %156 = vmatpush.bf16.msra.mxu1 %v333_v1  ;;  %v332_v4 = vld [vmem:[#allocation2 + $0x30] sm:$0xff]  ;;  %v331_v5 = vld [vmem:[#allocation2 + $0x28] sm:$0xff] }
   0xd   :  { %80 = vmatpush.bf16.msra.mxu0 %v71_v2  ;;  %v330_v6 = vld [vmem:[#allocation2 + $0x20] sm:$0xff]  ;;  %v329_v7 = vld [vmem:[#allocation2 + $0x18] sm:$0xff]  ;;  %v328_v8 = vld [vmem:[#allocation2 + $0x10] sm:$0xff] }
   0xe   :  { %v327_v9 = vld [vmem:[#allocation2 + $0x8] sm:$0xff]  ;;  %v326_v10 = vld [vmem:[#allocation2] sm:$0xff]  ;;  %v341_v11 = vld [vmem:[#allocation4 + $0x38] sm:$0xff] }
   0xf   :  { %239 = vmatpush.bf16.msra.mxu2 %v341_v11  ;;  %v340_v12 = vld [vmem:[#allocation4 + $0x30] sm:$0xff]  ;;  %v339_v13 = vld [vmem:[#allocation4 + $0x28] sm:$0xff]  ;;  %v338_v14 = vld [vmem:[#allocation4 + $0x20] sm:$0xff] }
  0x10   :  { %261 = vmatmul.msk.bf16.vlgmr.msra.gmra.mxu0 %vm65_vm1, %v59_v3  ;;  %157 = vmatpush.bf16.msra.mxu1 %v332_v4  ;;  %v337_v15 = vld [vmem:[#allocation4 + $0x18] sm:$0xff]  ;;  %v336_v16 = vld [vmem:[#allocation4 + $0x10] sm:$0xff]  ;;  %v346_v17 = vld [vmem:[%s473_s2] ss:$0 sm:$0xff] }
  0x11   :  { %v335_v23 = vld [vmem:[#allocation4 + $0x8] sm:$0xff]  ;;  %v334_v24 = vld [vmem:[#allocation4] sm:$0xff] }
  0x12   :  { %v347_v25 = vld [vmem:[%s475_s4] ss:$0 sm:$0xff] }
  0x13   :  { %240 = vmatpush.bf16.msra.mxu2 %v340_v12  ;;  %v348_v31 = vld [vmem:[%s477_s6] ss:$0 sm:$0xff] }
  0x14   :  { %158 = vmatpush.bf16.msra.mxu1 %v331_v5 }
  0x17   :  { %241 = vmatpush.bf16.msra.mxu2 %v339_v13 }
  0x18   :  { %159 = vmatpush.bf16.msra.mxu1 %v330_v6 }
  0x1b   :  { %242 = vmatpush.bf16.msra.mxu2 %v338_v14 }
  0x1c   :  { %160 = vmatpush.bf16.msra.mxu1 %v329_v7 }
  0x1f   :  { %243 = vmatpush.bf16.msra.mxu2 %v337_v15 }
  0x20   :  { %161 = vmatpush.bf16.msra.mxu1 %v328_v8 }
  0x23   :  { %244 = vmatpush.bf16.msra.mxu2 %v336_v16 }
  0x24   :  { %162 = vmatpush.bf16.msra.mxu1 %v327_v9 }
  0x27   :  { %245 = vmatpush.bf16.msra.mxu2 %v335_v23 }
  0x28   :  { %163 = vmatpush.bf16.msra.mxu1 %v326_v10 }
  0x2b   :  { %246 = vmatpush.bf16.msra.mxu2 %v334_v24 }
  0x8d   :  { %v82_v18 = vpop.f32.mrf.mxu0 }
  0x8e   :  { %v83_v19 = vadd.f32 %v346_v17, %v82_v18 }
  0x90   :  { %v86_v20 = vmax.f32 %v83_v19, 0.0 }
  0x92   :  { %v87_v21 = vpack.c.bf16 %v86_v20, %v86_v20 }
  0x94   :  { %164 = vmatmul.bf16.vlgmr.msra.gmra.mxu1 %v87_v21 }
  0x95   :  { %v84_v22 = vpop.f32.mrf.mxu0 }
 0x111   :  { %v165_v26 = vpop.f32.mrf.mxu1 }
 0x112   :  { %v166_v27 = vadd.f32 %v347_v25, %v165_v26 }
 0x114   :  { %v169_v28 = vmax.f32 %v166_v27, 0.0 }
 0x116   :  { %v170_v29 = vpack.c.bf16 %v169_v28, %v169_v28 }
 0x118   :  { %247 = vmatmul.bf16.vlgmr.msra.gmra.mxu2 %v170_v29 }
 0x119   :  { %v167_v30 = vpop.f32.mrf.mxu1 }
 0x19b   :  { %v248_v32 = vpop.f32.mrf.mxu2 }
 0x19c   :  { %v249_v33 = vadd.f32 %v348_v31, %v248_v32 }
 0x19e   :  { %349 = vtanh.f32 %v249_v33 }
 0x1a3   :  { %v250_v34 = vpop.f32.mrf.mxu2 }
 0x1a4   :  { %v350_v35 = vpop.eup %349 }
 0x1a5   :  { %v253_v36 = vpack.c.bf16 %v350_v35, %v350_v35 }
 0x1a7   :  { %254 = vst [vmem:[%s478_s7] sm:$0xf] %v253_v36 }
 0x1a8   :  { %259 = vsyncpa [#allocation3], 1 }
 0x1a9   :  { %260 = vsyncpa [#allocation5], 1 }

</bundles_post_ra>
